<compile_context>
chip_gen: v6e
topology: v6e:2x2x1
jax: 0.10.0
libtpu: 0.0.40
codegen_flags: <defaults>
</compile_context>

<pallas_src>
import functools

import jax
import jax.numpy as jnp
import numpy as np
from jax import lax
from jax.experimental import pallas as pl
from jax.experimental.pallas import tpu as pltpu


def upsample_conv_kernel(xc_ref, xt_ref, xb_ref, w_ref, b_ref, o_ref, *,
                         width, fuse_layout):
    # xc_ref: (1, C, TH*W)      row tile of the original input, (H,W) flattened
    # xt_ref: (1, 1, C, W)      halo row above the tile (zeros at the image top)
    # xb_ref: (1, 1, C, W)      halo row below the tile (zeros at the image bottom)
    # w_ref : (4C, 9C)          collapsed sub-pixel-phase weights (f32)
    # b_ref : (4C, 1)           per-phase-replicated bias (f32)
    # o_ref : fused  -> (1, C, TH, 4W)  final NCHW-ordered tile ((2r+di, 2j+dj))
    #         else   -> (1, 4C, TH*W)   phase-separated (host reshapes)
    c = xc_ref.shape[1]
    lout = xc_ref.shape[2]                  # TH * W
    th = lout // width

    center = xc_ref[0]                      # (C, TH*W)
    top = xt_ref[0, 0]                      # (C, W)
    bot = xb_ref[0, 0]                      # (C, W)
    xpad = jnp.concatenate([top, center, bot], axis=1)      # (C, (TH+2)*W)

    # (1, L) column-position masks for the +-1 column taps (zero 'same' padding).
    col = lax.broadcasted_iota(jnp.int32, (1, lout), 1)
    col = (col & (width - 1)) if (width & (width - 1)) == 0 else (col % width)
    not_first = col != 0
    not_last = col != width - 1

    # Three accumulated matmuls, one per original-row offset (-1, 0, +1); the three
    # column taps of each row group are built on the fly with static lane shifts.
    acc = None
    for oi in range(3):
        rp = xpad[:, oi * width: oi * width + lout]                     # (C, L)
        sh_r = jnp.concatenate([rp[:, :1], rp[:, :-1]], axis=1)         # col j-1
        sh_l = jnp.concatenate([rp[:, 1:], rp[:, -1:]], axis=1)         # col j+1
        lft = jnp.where(not_first, sh_r, 0.0)
        rgt = jnp.where(not_last, sh_l, 0.0)
        pat = jnp.concatenate([lft, rp, rgt], axis=0)                   # (3C, L)
        part = jnp.dot(w_ref[:, oi * 3 * c:(oi + 1) * 3 * c], pat,
                       preferred_element_type=jnp.float32)
        acc = part if acc is None else acc + part
    acc = acc + b_ref[...]                  # (4C, L); row (2*di+dj)*C + o

    if fuse_layout:
        # dj lane-interleave + di placement in VMEM -> tile already in final NCHW
        # order; the wrapper only does a free contiguous reshape.
        pieces = []
        for di in range(2):
            ev = acc[(2 * di) * c:(2 * di + 1) * c, :]          # dj = 0
            od = acc[(2 * di + 1) * c:(2 * di + 2) * c, :]      # dj = 1
            ilv = jnp.stack([ev, od], axis=-1).reshape(c, th, 2 * width)
            pieces.append(ilv)
        o_ref[0] = jnp.concatenate(pieces, axis=-1).astype(o_ref.dtype)  # (C, TH, 4W)
    else:
        o_ref[0] = acc.astype(o_ref.dtype)


def _phase_weights(w_oihw):
    """Collapse 3x3 conv + nearest-2x upsample into per-phase taps.

    Returns (4*C_out, 9*C_in): row p*C+o is phase p = di*2+dj, out-channel o;
    column s*C+i is the tap at original row/col offset s = oi*3+oj, in-channel i.
    """
    c_out, c_in, _, _ = w_oihw.shape
    t = np.zeros((2, 3, 3), np.float32)
    for d in range(2):
        for k in range(3):
            t[d, (d + k + 1) // 2, k] = 1.0
    t = jnp.asarray(t, w_oihw.dtype)
    wg = jnp.einsum("pgk,qhl,oikl->pqghoi", t, t, w_oihw)       # (2,2,3,3,Co,Ci)
    return wg.transpose(0, 1, 4, 2, 3, 5).reshape(4 * c_out, 9 * c_in)


def _vmem_params():
    """(per-tile byte budget, vmem_limit_bytes) per TPU generation."""
    try:
        cap = pltpu.get_tpu_info().vmem_capacity_bytes
    except Exception:
        cap = 64 * 1024 * 1024                      # conservative (v7x per-TC VMEM)
    if cap >= 96 * 1024 * 1024:                     # v5e / v6e class (128 MiB)
        return 14 * 1024 * 1024, 80 * 1024 * 1024
    return 7 * 1024 * 1024, 44 * 1024 * 1024        # v7x class (64 MiB)


def _pick_row_tile(h, w, c, itemsize, budget_bytes):
    """Largest row tile TH dividing H (TH%8==0 or TH==H) whose full per-tile VMEM
    footprint (double-buffered I/O + in-kernel taps/accumulator/epilogue temps)
    fits the budget; lane-dense (TH*W % 128 == 0) tiles preferred."""
    def tile_bytes(th):
        l = th * w
        io = 2 * itemsize * (c * l + 2 * c * w + 4 * c * l)     # double-buffered I/O
        tmp = 4 * 18 * c * l                                    # f32 intermediates
        return io + tmp

    best = None
    for th in range(h, 0, -1):
        if h % th or not (th % 8 == 0 or th == h):
            continue
        if tile_bytes(th) > budget_bytes:
            continue
        if (th * w) % 128 == 0 or th == h:
            return th
        if best is None:
            best = th
    if best is not None:
        return best
    for th in range(1, h + 1):                      # nothing fits: smallest legal tile
        if h % th == 0 and (th % 8 == 0 or th == h):
            return th
    return h


def upsampling_forward(x, w_oihw, bias, *, row_tile=None, fuse_layout=True):
    """UpSampling.forward: nearest 2x upsample + Conv2d(C, C, 3, 1, 1), NCHW in/out."""
    b, c, h, w = x.shape
    budget, vmem_limit = _vmem_params()
    th = row_tile if row_tile is not None else _pick_row_tile(
        h, w, c, x.dtype.itemsize, budget)
    assert h % th == 0 and (th % 8 == 0 or th == h), (h, th)
    nt = h // th
    l = th * w

    # Tiny halo-row arrays (2 rows per tile, ~2/TH of the input) with the image
    # top/bottom zero padding baked in; the bulk of the input streams straight
    # from the original NCHW tensor (no padded / stacked HBM copy).
    top = jnp.pad(x[:, :, th - 1:h - 1:th, :], ((0, 0), (0, 0), (1, 0), (0, 0)))
    bot = jnp.pad(x[:, :, th:h:th, :], ((0, 0), (0, 0), (0, 1), (0, 0)))
    top = top.transpose(0, 2, 1, 3)                 # (B, NT, C, W)
    bot = bot.transpose(0, 2, 1, 3)
    x_flat = x.reshape(b, c, h * w)

    wall = _phase_weights(w_oihw)                   # (4C, 9C) f32
    bcol = jnp.tile(bias, 4).reshape(4 * c, 1)      # (4C, 1)

    in_specs = [
        pl.BlockSpec((1, c, l), lambda ib, it: (ib, 0, it)),
        pl.BlockSpec((1, 1, c, w), lambda ib, it: (ib, it, 0, 0)),
        pl.BlockSpec((1, 1, c, w), lambda ib, it: (ib, it, 0, 0)),
        pl.BlockSpec((4 * c, 9 * c), lambda ib, it: (0, 0)),
        pl.BlockSpec((4 * c, 1), lambda ib, it: (0, 0)),
    ]
    if fuse_layout:
        # (B, C, H, 4W) is the final NCHW output up to a free contiguous reshape.
        out_shape = jax.ShapeDtypeStruct((b, c, h, 4 * w), x.dtype)
        out_spec = pl.BlockSpec((1, c, th, 4 * w), lambda ib, it: (ib, 0, it, 0))
    else:
        out_shape = jax.ShapeDtypeStruct((b, 4 * c, h * w), x.dtype)
        out_spec = pl.BlockSpec((1, 4 * c, l), lambda ib, it: (ib, 0, it))

    out = pl.pallas_call(
        functools.partial(upsample_conv_kernel, width=w, fuse_layout=fuse_layout),
        out_shape=out_shape,
        grid=(b, nt),
        in_specs=in_specs,
        out_specs=out_spec,
        compiler_params=pltpu.CompilerParams(
            dimension_semantics=("parallel", "parallel"),
            vmem_limit_bytes=vmem_limit,
        ),
    )(x_flat, top, bot, wall, bcol)

    if fuse_layout:
        return out.reshape(b, c, 2 * h, 2 * w)
    # Phase-separated fallback layout: un-interleave on the host.
    out = out.reshape(b, 2, 2, c, h, w).transpose(0, 3, 4, 1, 5, 2)
    return out.reshape(b, c, 2 * h, 2 * w)


def reference_forward(x_nchw, w_oihw, bias):
    """Pure-JAX reference (explicit upsample + lax.conv) for the correctness check."""
    xu = jnp.repeat(jnp.repeat(x_nchw, 2, axis=2), 2, axis=3)
    y = lax.conv_general_dilated(
        xu, w_oihw, window_strides=(1, 1), padding="SAME",
        dimension_numbers=("NCHW", "OIHW", "NCHW"))
    return y + bias.reshape(1, -1, 1, 1)


if __name__ == "__main__":
    B, C, H, W = 2, 4, 16, 16

    key = jax.random.PRNGKey(0)
    kx, kw, kb = jax.random.split(key, 3)

    x = jax.random.normal(kx, (B, C, H, W), dtype=jnp.float32)
    # Deterministic synthetic Conv2d(C, C, 3) parameters (PyTorch OIHW layout).
    fan_in = C * 3 * 3
    bound = 1.0 / (fan_in ** 0.5)
    w = jax.random.uniform(kw, (C, C, 3, 3), jnp.float32, -bound, bound)
    b = jax.random.uniform(kb, (C,), jnp.float32, -bound, bound)

    ref = jax.block_until_ready(reference_forward(x, w, b))

    def run(x_in, tile):
        try:
            return upsampling_forward(x_in, w, b, row_tile=tile, fuse_layout=True)
        except Exception:
            # TODO(synk): the fused (W,2)->(2W) lane merge in the epilogue may not
            # lower on every Mosaic version; the phase-separated output path keeps
            # all other optimizations and the same math.
            return upsampling_forward(x_in, w, b, row_tile=tile, fuse_layout=False)

    # Multi-tile path (2 batches x 2 halo'd row tiles, fused NCHW-ordered output).
    out = jax.block_until_ready(run(x, 8))
    assert out.shape == (B, C, 2 * H, 2 * W), out.shape
    assert jnp.allclose(out, ref, atol=1e-4, rtol=1e-4), \
        float(jnp.max(jnp.abs(out - ref)))

    # Auto tile-size path (largest legal tile within the per-generation VMEM budget).
    out_auto = jax.block_until_ready(run(x, None))
    assert jnp.allclose(out_auto, ref, atol=1e-4, rtol=1e-4), \
        float(jnp.max(jnp.abs(out_auto - ref)))

    # bf16 activation storage (halves HBM traffic of this memory-bound op),
    # f32 accumulation in the kernel; tolerance relaxed accordingly.
    out_bf16 = jax.block_until_ready(run(x.astype(jnp.bfloat16), 8))
    assert out_bf16.dtype == jnp.bfloat16
    assert jnp.allclose(out_bf16.astype(jnp.float32), ref, atol=5e-2, rtol=5e-2), \
        float(jnp.max(jnp.abs(out_bf16.astype(jnp.float32) - ref)))

    print("KERNEL_OK")
</pallas_src>

<mosaic_0001>
module attributes {stable_mosaic.version = 11 : i64} {
  func.func @upsample_conv_kernel(%arg0: i32, %arg1: i32, %arg2: memref<1x4x128xf32, #tpu.memory_space<vmem>>, %arg3: memref<1x1x4x16xf32, #tpu.memory_space<vmem>>, %arg4: memref<1x1x4x16xf32, #tpu.memory_space<vmem>>, %arg5: memref<16x36xf32, #tpu.memory_space<vmem>>, %arg6: memref<16x1xf32, #tpu.memory_space<vmem>>, %arg7: memref<1x4x8x64xf32, #tpu.memory_space<vmem>>) attributes {dimension_semantics = [#tpu.dimension_semantics<parallel>, #tpu.dimension_semantics<parallel>], iteration_bounds = array<i64: 2, 2>, scalar_prefetch = 0 : i64, scratch_operands = 0 : i64, tpu.core_type = #tpu.core_type<tc>, window_params = [{transform_indices = @transform_0, window_bounds = array<i64: 1, 4, 128>}, {transform_indices = @transform_1, window_bounds = array<i64: 1, 1, 4, 16>}, {transform_indices = @transform_2, window_bounds = array<i64: 1, 1, 4, 16>}, {pipeline_mode = #tpu.pipeline_mode<synchronous>, transform_indices = @transform_3, window_bounds = array<i64: 16, 36>}, {pipeline_mode = #tpu.pipeline_mode<synchronous>, transform_indices = @transform_4, window_bounds = array<i64: 16, 1>}, {transform_indices = @transform_5, window_bounds = array<i64: 1, 4, 8, 64>}]} {
    %c0 = arith.constant 0 : index
    %c0_0 = arith.constant 0 : index
    %c0_1 = arith.constant 0 : index
    %0 = vector.load %arg2[%c0, %c0_0, %c0_1] : memref<1x4x128xf32, #tpu.memory_space<vmem>>, vector<1x4x128xf32>
    %1 = vector.shape_cast %0 : vector<1x4x128xf32> to vector<4x128xf32>
    %c0_2 = arith.constant 0 : index
    %c0_3 = arith.constant 0 : index
    %c0_4 = arith.constant 0 : index
    %c0_5 = arith.constant 0 : index
    %2 = vector.load %arg3[%c0_2, %c0_3, %c0_4, %c0_5] : memref<1x1x4x16xf32, #tpu.memory_space<vmem>>, vector<1x1x4x16xf32>
    %3 = vector.shape_cast %2 : vector<1x1x4x16xf32> to vector<4x16xf32>
    %c0_6 = arith.constant 0 : index
    %c0_7 = arith.constant 0 : index
    %c0_8 = arith.constant 0 : index
    %c0_9 = arith.constant 0 : index
    %4 = vector.load %arg4[%c0_6, %c0_7, %c0_8, %c0_9] : memref<1x1x4x16xf32, #tpu.memory_space<vmem>>, vector<1x1x4x16xf32>
    %5 = vector.shape_cast %4 : vector<1x1x4x16xf32> to vector<4x16xf32>
    %6 = tpu.concatenate %3, %1, %5 in 1 : vector<4x16xf32>, vector<4x128xf32>, vector<4x16xf32> -> vector<4x160xf32>
    %7 = tpu.iota {dimensions = array<i32: 1>} : vector<1x128xi32>
    %c15_i32 = arith.constant 15 : i32
    %8 = vector.broadcast %c15_i32 : i32 to vector<1x128xi32>
    %9 = arith.andi %7, %8 : vector<1x128xi32>
    %c0_i32 = arith.constant 0 : i32
    %10 = vector.broadcast %c0_i32 : i32 to vector<1x128xi32>
    %11 = arith.cmpi ne, %9, %10 : vector<1x128xi32>
    %c15_i32_10 = arith.constant 15 : i32
    %12 = vector.broadcast %c15_i32_10 : i32 to vector<1x128xi32>
    %13 = arith.cmpi ne, %9, %12 : vector<1x128xi32>
    %14 = vector.extract_strided_slice %6 {offsets = [0, 0], sizes = [4, 128], strides = [1, 1]} : vector<4x160xf32> to vector<4x128xf32>
    %15 = vector.extract_strided_slice %14 {offsets = [0, 0], sizes = [4, 1], strides = [1, 1]} : vector<4x128xf32> to vector<4x1xf32>
    %16 = vector.extract_strided_slice %14 {offsets = [0, 0], sizes = [4, 127], strides = [1, 1]} : vector<4x128xf32> to vector<4x127xf32>
    %17 = tpu.concatenate %15, %16 in 1 : vector<4x1xf32>, vector<4x127xf32> -> vector<4x128xf32>
    %18 = vector.extract_strided_slice %14 {offsets = [0, 1], sizes = [4, 127], strides = [1, 1]} : vector<4x128xf32> to vector<4x127xf32>
    %19 = vector.extract_strided_slice %14 {offsets = [0, 127], sizes = [4, 1], strides = [1, 1]} : vector<4x128xf32> to vector<4x1xf32>
    %20 = tpu.concatenate %18, %19 in 1 : vector<4x127xf32>, vector<4x1xf32> -> vector<4x128xf32>
    %cst = arith.constant 0.000000e+00 : f32
    %21 = vector.shape_cast %11 : vector<1x128xi1> to vector<1x128xi1>
    %22 = vector.broadcast %21 : vector<1x128xi1> to vector<4x128xi1>
    %23 = vector.broadcast %cst : f32 to vector<4x128xf32>
    %24 = arith.select %22, %17, %23 : vector<4x128xi1>, vector<4x128xf32>
    %cst_11 = arith.constant 0.000000e+00 : f32
    %25 = vector.shape_cast %13 : vector<1x128xi1> to vector<1x128xi1>
    %26 = vector.broadcast %25 : vector<1x128xi1> to vector<4x128xi1>
    %27 = vector.broadcast %cst_11 : f32 to vector<4x128xf32>
    %28 = arith.select %26, %20, %27 : vector<4x128xi1>, vector<4x128xf32>
    %29 = tpu.concatenate %24, %14, %28 in 0 : vector<4x128xf32>, vector<4x128xf32>, vector<4x128xf32> -> vector<12x128xf32>
    %c0_12 = arith.constant 0 : index
    %c0_13 = arith.constant 0 : index
    %30 = vector.load %arg5[%c0_12, %c0_13] : memref<16x36xf32, #tpu.memory_space<vmem>>, vector<16x12xf32>
    %cst_14 = arith.constant dense<0.000000e+00> : vector<16x128xf32>
    %31 = tpu.matmul %30, %29, %cst_14 {dimension_numbers = #tpu.dot_dimension_numbers<[1], [0], [0], [1], [0, 0, 1, 1], [], []>} : vector<16x12xf32>, vector<12x128xf32>, vector<16x128xf32> -> vector<16x128xf32>
    %32 = vector.extract_strided_slice %6 {offsets = [0, 16], sizes = [4, 128], strides = [1, 1]} : vector<4x160xf32> to vector<4x128xf32>
    %33 = vector.extract_strided_slice %32 {offsets = [0, 0], sizes = [4, 1], strides = [1, 1]} : vector<4x128xf32> to vector<4x1xf32>
    %34 = vector.extract_strided_slice %32 {offsets = [0, 0], sizes = [4, 127], strides = [1, 1]} : vector<4x128xf32> to vector<4x127xf32>
    %35 = tpu.concatenate %33, %34 in 1 : vector<4x1xf32>, vector<4x127xf32> -> vector<4x128xf32>
    %36 = vector.extract_strided_slice %32 {offsets = [0, 1], sizes = [4, 127], strides = [1, 1]} : vector<4x128xf32> to vector<4x127xf32>
    %37 = vector.extract_strided_slice %32 {offsets = [0, 127], sizes = [4, 1], strides = [1, 1]} : vector<4x128xf32> to vector<4x1xf32>
    %38 = tpu.concatenate %36, %37 in 1 : vector<4x127xf32>, vector<4x1xf32> -> vector<4x128xf32>
    %cst_15 = arith.constant 0.000000e+00 : f32
    %39 = vector.shape_cast %11 : vector<1x128xi1> to vector<1x128xi1>
    %40 = vector.broadcast %39 : vector<1x128xi1> to vector<4x128xi1>
    %41 = vector.broadcast %cst_15 : f32 to vector<4x128xf32>
    %42 = arith.select %40, %35, %41 : vector<4x128xi1>, vector<4x128xf32>
    %cst_16 = arith.constant 0.000000e+00 : f32
    %43 = vector.shape_cast %13 : vector<1x128xi1> to vector<1x128xi1>
    %44 = vector.broadcast %43 : vector<1x128xi1> to vector<4x128xi1>
    %45 = vector.broadcast %cst_16 : f32 to vector<4x128xf32>
    %46 = arith.select %44, %38, %45 : vector<4x128xi1>, vector<4x128xf32>
    %47 = tpu.concatenate %42, %32, %46 in 0 : vector<4x128xf32>, vector<4x128xf32>, vector<4x128xf32> -> vector<12x128xf32>
    %c0_17 = arith.constant 0 : index
    %c12 = arith.constant 12 : index
    %48 = vector.load %arg5[%c0_17, %c12] : memref<16x36xf32, #tpu.memory_space<vmem>>, vector<16x12xf32>
    %cst_18 = arith.constant dense<0.000000e+00> : vector<16x128xf32>
    %49 = tpu.matmul %48, %47, %cst_18 {dimension_numbers = #tpu.dot_dimension_numbers<[1], [0], [0], [1], [0, 0, 1, 1], [], []>} : vector<16x12xf32>, vector<12x128xf32>, vector<16x128xf32> -> vector<16x128xf32>
    %50 = arith.addf %31, %49 : vector<16x128xf32>
    %51 = vector.extract_strided_slice %6 {offsets = [0, 32], sizes = [4, 128], strides = [1, 1]} : vector<4x160xf32> to vector<4x128xf32>
    %52 = vector.extract_strided_slice %51 {offsets = [0, 0], sizes = [4, 1], strides = [1, 1]} : vector<4x128xf32> to vector<4x1xf32>
    %53 = vector.extract_strided_slice %51 {offsets = [0, 0], sizes = [4, 127], strides = [1, 1]} : vector<4x128xf32> to vector<4x127xf32>
    %54 = tpu.concatenate %52, %53 in 1 : vector<4x1xf32>, vector<4x127xf32> -> vector<4x128xf32>
    %55 = vector.extract_strided_slice %51 {offsets = [0, 1], sizes = [4, 127], strides = [1, 1]} : vector<4x128xf32> to vector<4x127xf32>
    %56 = vector.extract_strided_slice %51 {offsets = [0, 127], sizes = [4, 1], strides = [1, 1]} : vector<4x128xf32> to vector<4x1xf32>
    %57 = tpu.concatenate %55, %56 in 1 : vector<4x127xf32>, vector<4x1xf32> -> vector<4x128xf32>
    %cst_19 = arith.constant 0.000000e+00 : f32
    %58 = vector.shape_cast %11 : vector<1x128xi1> to vector<1x128xi1>
    %59 = vector.broadcast %58 : vector<1x128xi1> to vector<4x128xi1>
    %60 = vector.broadcast %cst_19 : f32 to vector<4x128xf32>
    %61 = arith.select %59, %54, %60 : vector<4x128xi1>, vector<4x128xf32>
    %cst_20 = arith.constant 0.000000e+00 : f32
    %62 = vector.shape_cast %13 : vector<1x128xi1> to vector<1x128xi1>
    %63 = vector.broadcast %62 : vector<1x128xi1> to vector<4x128xi1>
    %64 = vector.broadcast %cst_20 : f32 to vector<4x128xf32>
    %65 = arith.select %63, %57, %64 : vector<4x128xi1>, vector<4x128xf32>
    %66 = tpu.concatenate %61, %51, %65 in 0 : vector<4x128xf32>, vector<4x128xf32>, vector<4x128xf32> -> vector<12x128xf32>
    %c0_21 = arith.constant 0 : index
    %c24 = arith.constant 24 : index
    %67 = vector.load %arg5[%c0_21, %c24] : memref<16x36xf32, #tpu.memory_space<vmem>>, vector<16x12xf32>
    %cst_22 = arith.constant dense<0.000000e+00> : vector<16x128xf32>
    %68 = tpu.matmul %67, %66, %cst_22 {dimension_numbers = #tpu.dot_dimension_numbers<[1], [0], [0], [1], [0, 0, 1, 1], [], []>} : vector<16x12xf32>, vector<12x128xf32>, vector<16x128xf32> -> vector<16x128xf32>
    %69 = arith.addf %50, %68 : vector<16x128xf32>
    %c0_23 = arith.constant 0 : index
    %c0_24 = arith.constant 0 : index
    %70 = vector.load %arg6[%c0_23, %c0_24] : memref<16x1xf32, #tpu.memory_space<vmem>>, vector<16x1xf32>
    %71 = vector.broadcast %70 : vector<16x1xf32> to vector<16x128xf32>
    %72 = arith.addf %69, %71 : vector<16x128xf32>
    %73 = vector.extract_strided_slice %72 {offsets = [0, 0], sizes = [4, 128], strides = [1, 1]} : vector<16x128xf32> to vector<4x128xf32>
    %74 = vector.extract_strided_slice %72 {offsets = [4, 0], sizes = [4, 128], strides = [1, 1]} : vector<16x128xf32> to vector<4x128xf32>
    %75 = vector.shape_cast %73 : vector<4x128xf32> to vector<4x128x1xf32>
    %76 = vector.shape_cast %74 : vector<4x128xf32> to vector<4x128x1xf32>
    %77 = tpu.concatenate %75, %76 in 2 : vector<4x128x1xf32>, vector<4x128x1xf32> -> vector<4x128x2xf32>
    %78 = vector.shape_cast %77 : vector<4x128x2xf32> to vector<4x8x32xf32>
    %79 = vector.extract_strided_slice %72 {offsets = [8, 0], sizes = [4, 128], strides = [1, 1]} : vector<16x128xf32> to vector<4x128xf32>
    %80 = vector.extract_strided_slice %72 {offsets = [12, 0], sizes = [4, 128], strides = [1, 1]} : vector<16x128xf32> to vector<4x128xf32>
    %81 = vector.shape_cast %79 : vector<4x128xf32> to vector<4x128x1xf32>
    %82 = vector.shape_cast %80 : vector<4x128xf32> to vector<4x128x1xf32>
    %83 = tpu.concatenate %81, %82 in 2 : vector<4x128x1xf32>, vector<4x128x1xf32> -> vector<4x128x2xf32>
    %84 = vector.shape_cast %83 : vector<4x128x2xf32> to vector<4x8x32xf32>
    %85 = tpu.concatenate %78, %84 in 2 : vector<4x8x32xf32>, vector<4x8x32xf32> -> vector<4x8x64xf32>
    %c0_25 = arith.constant 0 : index
    %c0_26 = arith.constant 0 : index
    %c0_27 = arith.constant 0 : index
    %c0_28 = arith.constant 0 : index
    %86 = vector.load %arg7[%c0_25, %c0_26, %c0_27, %c0_28] : memref<1x4x8x64xf32, #tpu.memory_space<vmem>>, vector<1x4x8x64xf32>
    %87 = vector.shape_cast %86 : vector<1x4x8x64xf32> to vector<4x8x64xf32>
    %88 = vector.shape_cast %85 : vector<4x8x64xf32> to vector<1x4x8x64xf32>
    tpu.vector_store %arg7[%c0_25, %c0_26, %c0_27, %c0_28], %88 {strides = array<i32>} : memref<1x4x8x64xf32, #tpu.memory_space<vmem>>, vector<1x4x8x64xf32>,
    return
  }
  func.func @transform_0(%arg0: i32, %arg1: i32) -> (i32, i32, i32) {
    %c0_i32 = arith.constant 0 : i32
    %c0_i32_0 = arith.constant 0 : i32
    return %arg0, %c0_i32, %arg1 : i32, i32, i32
  }
  func.func @transform_1(%arg0: i32, %arg1: i32) -> (i32, i32, i32, i32) {
    %c0_i32 = arith.constant 0 : i32
    %c0_i32_0 = arith.constant 0 : i32
    %c0_i32_1 = arith.constant 0 : i32
    return %arg0, %arg1, %c0_i32, %c0_i32_0 : i32, i32, i32, i32
  }
  func.func @transform_2(%arg0: i32, %arg1: i32) -> (i32, i32, i32, i32) {
    %c0_i32 = arith.constant 0 : i32
    %c0_i32_0 = arith.constant 0 : i32
    %c0_i32_1 = arith.constant 0 : i32
    return %arg0, %arg1, %c0_i32, %c0_i32_0 : i32, i32, i32, i32
  }
  func.func @transform_3(%arg0: i32, %arg1: i32) -> (i32, i32) {
    %c0_i32 = arith.constant 0 : i32
    %c0_i32_0 = arith.constant 0 : i32
    %c0_i32_1 = arith.constant 0 : i32
    return %c0_i32, %c0_i32_0 : i32, i32
  }
  func.func @transform_4(%arg0: i32, %arg1: i32) -> (i32, i32) {
    %c0_i32 = arith.constant 0 : i32
    %c0_i32_0 = arith.constant 0 : i32
    %c0_i32_1 = arith.constant 0 : i32
    return %c0_i32, %c0_i32_0 : i32, i32
  }
  func.func @transform_5(%arg0: i32, %arg1: i32) -> (i32, i32, i32, i32) {
    %c0_i32 = arith.constant 0 : i32
    %c0_i32_0 = arith.constant 0 : i32
    %c0_i32_1 = arith.constant 0 : i32
    return %arg0, %c0_i32, %arg1, %c0_i32_0 : i32, i32, i32, i32
  }
}

module attributes {stable_mosaic.version = 11 : i64} {
  func.func @upsample_conv_kernel(%arg0: i32, %arg1: i32, %arg2: memref<1x4x128xf32, #tpu.memory_space<vmem>>, %arg3: memref<1x1x4x16xf32, #tpu.memory_space<vmem>>, %arg4: memref<1x1x4x16xf32, #tpu.memory_space<vmem>>, %arg5: memref<16x36xf32, #tpu.memory_space<vmem>>, %arg6: memref<16x1xf32, #tpu.memory_space<vmem>>, %arg7: memref<1x16x128xf32, #tpu.memory_space<vmem>>) attributes {dimension_semantics = [#tpu.dimension_semantics<parallel>, #tpu.dimension_semantics<parallel>], iteration_bounds = array<i64: 2, 2>, scalar_prefetch = 0 : i64, scratch_operands = 0 : i64, tpu.core_type = #tpu.core_type<tc>, window_params = [{transform_indices = @transform_0, window_bounds = array<i64: 1, 4, 128>}, {transform_indices = @transform_1, window_bounds = array<i64: 1, 1, 4, 16>}, {transform_indices = @transform_2, window_bounds = array<i64: 1, 1, 4, 16>}, {pipeline_mode = #tpu.pipeline_mode<synchronous>, transform_indices = @transform_3, window_bounds = array<i64: 16, 36>}, {pipeline_mode = #tpu.pipeline_mode<synchronous>, transform_indices = @transform_4, window_bounds = array<i64: 16, 1>}, {transform_indices = @transform_5, window_bounds = array<i64: 1, 16, 128>}]} {
    %c0 = arith.constant 0 : index
    %c0_0 = arith.constant 0 : index
    %c0_1 = arith.constant 0 : index
    %0 = vector.load %arg2[%c0, %c0_0, %c0_1] : memref<1x4x128xf32, #tpu.memory_space<vmem>>, vector<1x4x128xf32>
    %1 = vector.shape_cast %0 : vector<1x4x128xf32> to vector<4x128xf32>
    %c0_2 = arith.constant 0 : index
    %c0_3 = arith.constant 0 : index
    %c0_4 = arith.constant 0 : index
    %c0_5 = arith.constant 0 : index
    %2 = vector.load %arg3[%c0_2, %c0_3, %c0_4, %c0_5] : memref<1x1x4x16xf32, #tpu.memory_space<vmem>>, vector<1x1x4x16xf32>
    %3 = vector.shape_cast %2 : vector<1x1x4x16xf32> to vector<4x16xf32>
    %c0_6 = arith.constant 0 : index
    %c0_7 = arith.constant 0 : index
    %c0_8 = arith.constant 0 : index
    %c0_9 = arith.constant 0 : index
    %4 = vector.load %arg4[%c0_6, %c0_7, %c0_8, %c0_9] : memref<1x1x4x16xf32, #tpu.memory_space<vmem>>, vector<1x1x4x16xf32>
    %5 = vector.shape_cast %4 : vector<1x1x4x16xf32> to vector<4x16xf32>
    %6 = tpu.concatenate %3, %1, %5 in 1 : vector<4x16xf32>, vector<4x128xf32>, vector<4x16xf32> -> vector<4x160xf32>
    %7 = tpu.iota {dimensions = array<i32: 1>} : vector<1x128xi32>
    %c15_i32 = arith.constant 15 : i32
    %8 = vector.broadcast %c15_i32 : i32 to vector<1x128xi32>
    %9 = arith.andi %7, %8 : vector<1x128xi32>
    %c0_i32 = arith.constant 0 : i32
    %10 = vector.broadcast %c0_i32 : i32 to vector<1x128xi32>
    %11 = arith.cmpi ne, %9, %10 : vector<1x128xi32>
    %c15_i32_10 = arith.constant 15 : i32
    %12 = vector.broadcast %c15_i32_10 : i32 to vector<1x128xi32>
    %13 = arith.cmpi ne, %9, %12 : vector<1x128xi32>
    %14 = vector.extract_strided_slice %6 {offsets = [0, 0], sizes = [4, 128], strides = [1, 1]} : vector<4x160xf32> to vector<4x128xf32>
    %15 = vector.extract_strided_slice %14 {offsets = [0, 0], sizes = [4, 1], strides = [1, 1]} : vector<4x128xf32> to vector<4x1xf32>
    %16 = vector.extract_strided_slice %14 {offsets = [0, 0], sizes = [4, 127], strides = [1, 1]} : vector<4x128xf32> to vector<4x127xf32>
    %17 = tpu.concatenate %15, %16 in 1 : vector<4x1xf32>, vector<4x127xf32> -> vector<4x128xf32>
    %18 = vector.extract_strided_slice %14 {offsets = [0, 1], sizes = [4, 127], strides = [1, 1]} : vector<4x128xf32> to vector<4x127xf32>
    %19 = vector.extract_strided_slice %14 {offsets = [0, 127], sizes = [4, 1], strides = [1, 1]} : vector<4x128xf32> to vector<4x1xf32>
    %20 = tpu.concatenate %18, %19 in 1 : vector<4x127xf32>, vector<4x1xf32> -> vector<4x128xf32>
    %cst = arith.constant 0.000000e+00 : f32
    %21 = vector.shape_cast %11 : vector<1x128xi1> to vector<1x128xi1>
    %22 = vector.broadcast %21 : vector<1x128xi1> to vector<4x128xi1>
    %23 = vector.broadcast %cst : f32 to vector<4x128xf32>
    %24 = arith.select %22, %17, %23 : vector<4x128xi1>, vector<4x128xf32>
    %cst_11 = arith.constant 0.000000e+00 : f32
    %25 = vector.shape_cast %13 : vector<1x128xi1> to vector<1x128xi1>
    %26 = vector.broadcast %25 : vector<1x128xi1> to vector<4x128xi1>
    %27 = vector.broadcast %cst_11 : f32 to vector<4x128xf32>
    %28 = arith.select %26, %20, %27 : vector<4x128xi1>, vector<4x128xf32>
    %29 = tpu.concatenate %24, %14, %28 in 0 : vector<4x128xf32>, vector<4x128xf32>, vector<4x128xf32> -> vector<12x128xf32>
    %c0_12 = arith.constant 0 : index
    %c0_13 = arith.constant 0 : index
    %30 = vector.load %arg5[%c0_12, %c0_13] : memref<16x36xf32, #tpu.memory_space<vmem>>, vector<16x12xf32>
    %cst_14 = arith.constant dense<0.000000e+00> : vector<16x128xf32>
    %31 = tpu.matmul %30, %29, %cst_14 {dimension_numbers = #tpu.dot_dimension_numbers<[1], [0], [0], [1], [0, 0, 1, 1], [], []>} : vector<16x12xf32>, vector<12x128xf32>, vector<16x128xf32> -> vector<16x128xf32>
    %32 = vector.extract_strided_slice %6 {offsets = [0, 16], sizes = [4, 128], strides = [1, 1]} : vector<4x160xf32> to vector<4x128xf32>
    %33 = vector.extract_strided_slice %32 {offsets = [0, 0], sizes = [4, 1], strides = [1, 1]} : vector<4x128xf32> to vector<4x1xf32>
    %34 = vector.extract_strided_slice %32 {offsets = [0, 0], sizes = [4, 127], strides = [1, 1]} : vector<4x128xf32> to vector<4x127xf32>
    %35 = tpu.concatenate %33, %34 in 1 : vector<4x1xf32>, vector<4x127xf32> -> vector<4x128xf32>
    %36 = vector.extract_strided_slice %32 {offsets = [0, 1], sizes = [4, 127], strides = [1, 1]} : vector<4x128xf32> to vector<4x127xf32>
    %37 = vector.extract_strided_slice %32 {offsets = [0, 127], sizes = [4, 1], strides = [1, 1]} : vector<4x128xf32> to vector<4x1xf32>
    %38 = tpu.concatenate %36, %37 in 1 : vector<4x127xf32>, vector<4x1xf32> -> vector<4x128xf32>
    %cst_15 = arith.constant 0.000000e+00 : f32
    %39 = vector.shape_cast %11 : vector<1x128xi1> to vector<1x128xi1>
    %40 = vector.broadcast %39 : vector<1x128xi1> to vector<4x128xi1>
    %41 = vector.broadcast %cst_15 : f32 to vector<4x128xf32>
    %42 = arith.select %40, %35, %41 : vector<4x128xi1>, vector<4x128xf32>
    %cst_16 = arith.constant 0.000000e+00 : f32
    %43 = vector.shape_cast %13 : vector<1x128xi1> to vector<1x128xi1>
    %44 = vector.broadcast %43 : vector<1x128xi1> to vector<4x128xi1>
    %45 = vector.broadcast %cst_16 : f32 to vector<4x128xf32>
    %46 = arith.select %44, %38, %45 : vector<4x128xi1>, vector<4x128xf32>
    %47 = tpu.concatenate %42, %32, %46 in 0 : vector<4x128xf32>, vector<4x128xf32>, vector<4x128xf32> -> vector<12x128xf32>
    %c0_17 = arith.constant 0 : index
    %c12 = arith.constant 12 : index
    %48 = vector.load %arg5[%c0_17, %c12] : memref<16x36xf32, #tpu.memory_space<vmem>>, vector<16x12xf32>
    %cst_18 = arith.constant dense<0.000000e+00> : vector<16x128xf32>
    %49 = tpu.matmul %48, %47, %cst_18 {dimension_numbers = #tpu.dot_dimension_numbers<[1], [0], [0], [1], [0, 0, 1, 1], [], []>} : vector<16x12xf32>, vector<12x128xf32>, vector<16x128xf32> -> vector<16x128xf32>
    %50 = arith.addf %31, %49 : vector<16x128xf32>
    %51 = vector.extract_strided_slice %6 {offsets = [0, 32], sizes = [4, 128], strides = [1, 1]} : vector<4x160xf32> to vector<4x128xf32>
    %52 = vector.extract_strided_slice %51 {offsets = [0, 0], sizes = [4, 1], strides = [1, 1]} : vector<4x128xf32> to vector<4x1xf32>
    %53 = vector.extract_strided_slice %51 {offsets = [0, 0], sizes = [4, 127], strides = [1, 1]} : vector<4x128xf32> to vector<4x127xf32>
    %54 = tpu.concatenate %52, %53 in 1 : vector<4x1xf32>, vector<4x127xf32> -> vector<4x128xf32>
    %55 = vector.extract_strided_slice %51 {offsets = [0, 1], sizes = [4, 127], strides = [1, 1]} : vector<4x128xf32> to vector<4x127xf32>
    %56 = vector.extract_strided_slice %51 {offsets = [0, 127], sizes = [4, 1], strides = [1, 1]} : vector<4x128xf32> to vector<4x1xf32>
    %57 = tpu.concatenate %55, %56 in 1 : vector<4x127xf32>, vector<4x1xf32> -> vector<4x128xf32>
    %cst_19 = arith.constant 0.000000e+00 : f32
    %58 = vector.shape_cast %11 : vector<1x128xi1> to vector<1x128xi1>
    %59 = vector.broadcast %58 : vector<1x128xi1> to vector<4x128xi1>
    %60 = vector.broadcast %cst_19 : f32 to vector<4x128xf32>
    %61 = arith.select %59, %54, %60 : vector<4x128xi1>, vector<4x128xf32>
    %cst_20 = arith.constant 0.000000e+00 : f32
    %62 = vector.shape_cast %13 : vector<1x128xi1> to vector<1x128xi1>
    %63 = vector.broadcast %62 : vector<1x128xi1> to vector<4x128xi1>
    %64 = vector.broadcast %cst_20 : f32 to vector<4x128xf32>
    %65 = arith.select %63, %57, %64 : vector<4x128xi1>, vector<4x128xf32>
    %66 = tpu.concatenate %61, %51, %65 in 0 : vector<4x128xf32>, vector<4x128xf32>, vector<4x128xf32> -> vector<12x128xf32>
    %c0_21 = arith.constant 0 : index
    %c24 = arith.constant 24 : index
    %67 = vector.load %arg5[%c0_21, %c24] : memref<16x36xf32, #tpu.memory_space<vmem>>, vector<16x12xf32>
    %cst_22 = arith.constant dense<0.000000e+00> : vector<16x128xf32>
    %68 = tpu.matmul %67, %66, %cst_22 {dimension_numbers = #tpu.dot_dimension_numbers<[1], [0], [0], [1], [0, 0, 1, 1], [], []>} : vector<16x12xf32>, vector<12x128xf32>, vector<16x128xf32> -> vector<16x128xf32>
    %69 = arith.addf %50, %68 : vector<16x128xf32>
    %c0_23 = arith.constant 0 : index
    %c0_24 = arith.constant 0 : index
    %70 = vector.load %arg6[%c0_23, %c0_24] : memref<16x1xf32, #tpu.memory_space<vmem>>, vector<16x1xf32>
    %71 = vector.broadcast %70 : vector<16x1xf32> to vector<16x128xf32>
    %72 = arith.addf %69, %71 : vector<16x128xf32>
    %c0_25 = arith.constant 0 : index
    %c0_26 = arith.constant 0 : index
    %c0_27 = arith.constant 0 : index
    %73 = vector.load %arg7[%c0_25, %c0_26, %c0_27] : memref<1x16x128xf32, #tpu.memory_space<vmem>>, vector<1x16x128xf32>
    %74 = vector.shape_cast %73 : vector<1x16x128xf32> to vector<16x128xf32>
    %75 = vector.shape_cast %72 : vector<16x128xf32> to vector<1x16x128xf32>
    tpu.vector_store %arg7[%c0_25, %c0_26, %c0_27], %75 {strides = array<i32>} : memref<1x16x128xf32, #tpu.memory_space<vmem>>, vector<1x16x128xf32>,
    return
  }
  func.func @transform_0(%arg0: i32, %arg1: i32) -> (i32, i32, i32) {
    %c0_i32 = arith.constant 0 : i32
    %c0_i32_0 = arith.constant 0 : i32
    return %arg0, %c0_i32, %arg1 : i32, i32, i32
  }
  func.func @transform_1(%arg0: i32, %arg1: i32) -> (i32, i32, i32, i32) {
    %c0_i32 = arith.constant 0 : i32
    %c0_i32_0 = arith.constant 0 : i32
    %c0_i32_1 = arith.constant 0 : i32
    return %arg0, %arg1, %c0_i32, %c0_i32_0 : i32, i32, i32, i32
  }
  func.func @transform_2(%arg0: i32, %arg1: i32) -> (i32, i32, i32, i32) {
    %c0_i32 = arith.constant 0 : i32
    %c0_i32_0 = arith.constant 0 : i32
    %c0_i32_1 = arith.constant 0 : i32
    return %arg0, %arg1, %c0_i32, %c0_i32_0 : i32, i32, i32, i32
  }
  func.func @transform_3(%arg0: i32, %arg1: i32) -> (i32, i32) {
    %c0_i32 = arith.constant 0 : i32
    %c0_i32_0 = arith.constant 0 : i32
    %c0_i32_1 = arith.constant 0 : i32
    return %c0_i32, %c0_i32_0 : i32, i32
  }
  func.func @transform_4(%arg0: i32, %arg1: i32) -> (i32, i32) {
    %c0_i32 = arith.constant 0 : i32
    %c0_i32_0 = arith.constant 0 : i32
    %c0_i32_1 = arith.constant 0 : i32
    return %c0_i32, %c0_i32_0 : i32, i32
  }
  func.func @transform_5(%arg0: i32, %arg1: i32) -> (i32, i32, i32) {
    %c0_i32 = arith.constant 0 : i32
    %c0_i32_0 = arith.constant 0 : i32
    return %arg0, %c0_i32, %arg1 : i32, i32, i32
  }
}

</mosaic_0001>

<bundles_post_ra>
// kernel: tpu_custom_call.1
= control target key start
LH: loop header
LB: loop body
LE: loop exit
PB: predicated region body
PF: predicated region fallthrough
CT: control target
= control target key end

     0   :  { %s1589_s0 = inlined_call_operand.vmem [shape: f32[2,4,256], index: 0, kind: input, shape index: {}]   ;;  %s1590_s1 = inlined_call_operand.hbm [shape: f32[2,2,4,16], index: 1, kind: input, shape index: {}]   ;;  %s1591_s2 = inlined_call_operand.hbm [shape: f32[2,2,4,16], index: 2, kind: input, shape index: {}]   ;;  %s1592_s3 = inlined_call_operand.hbm [shape: f32[16,36], index: 3, kind: input, shape index: {}]   ;;  %s1593_s4 = inlined_call_operand.vmem [shape: f32[16,1], index: 4, kind: input, shape index: {}]   ;;  %s1594_s5 = inlined_call_operand.hbm [shape: f32[2,16,256], index: 5, kind: output, shape index: {}]  }
   0x1   :  { %1602 = sst [smem:[#allocation18_spill]] %s1592_s3 }
   0x2   :  { %1603 = sst [smem:[#allocation19_spill]] %s1594_s5 }
   0x3   :  { %10 = vsyncpa [#allocation3], 0 }
   0x4   :  { %12 = vsyncpa [#allocation3 + $0x1], 0 }
   0x5   :  { %13 = vsyncpa [#allocation6], 0 }
   0x6   :  { %15 = vsyncpa [#allocation6 + $0x1], 0 }
   0x7   :  { %16 = vsyncpa [#allocation4], 0 }
   0x8   :  { %18 = vsyncpa [#allocation4 + $0x1], 0  ;;  %s1299_s18 = smov 0   ;;  %s1301_s19 = smov 0  }
   0x9   :  { %s1303_s20 = smov 0   ;;  %s1305_s21 = smov 0  }
   0xa   :  { %s1307_s22 = smov 0   ;;  %s1309_s23 = smov 0  }
   0xb   :  { %s1311_s24 = smov 0   ;;  %s1313_s25 = smov 0  }
   0xc LB: > { %1604 = sst [smem:[#allocation13_spill]] %s1218_s18  ;;  %s1340_s26 = sadd.s32 4294967295, %s1246_s25   ;;  %s1246_s25 = sphi %s1313_s25, %s24_s25   ;;  %s1242_s24 = sphi %s1311_s24, %s1634_s24   ;;  %s1238_s23 = sphi %s1309_s23, %s1633_s23   ;;  %s1234_s22 = sphi %s1307_s22, %s1632_s22   ;;  %s1230_s21 = sphi %s1305_s21, %s1631_s21   ;;  %s1226_s20 = sphi %s1303_s20, %s1630_s20   ;;  %s1222_s19 = sphi %s1301_s19, %s1629_s19   ;;  %s1218_s18 = sphi %s1299_s18, %s1628_s18  }
   0xd   : > { %s883_s27 = sadd.s32 4294967294, %s1246_s25   ;;  %p86_p0 = scmp.ne.s32.totalorder %s1222_s19, %s1218_s18 }
   0xe   : > { %p87_p1 = scmp.eq.s32.totalorder %s1340_s26, 0  ;;  %p188_p3 = scmp.eq.s32.totalorder %s883_s27, 3 }
   0xf   : > { %p884_p5 = scmp.ge.s32.totalorder %s1246_s25, 1  ;;  %p195_p7 = scmp.lt.s32.totalorder %s1246_s25, 5 }
  0x10   : > { %p1349_p4 = por %p87_p1, %p86_p0  ;;  %p1354_p6 = por %p188_p3, %p86_p0 }
  0x11   : > { %p1359_p8 = pnand %p884_p5, %p195_p7  ;;  %s1248_s6 = smov [#allocation7]  }
  0x12   : > { %s1606_s29 = scalar_select %p1354_p6, 1, 0 }
  0x13   : > { %s207_s7 = sshll.u32 %s1248_s6, 4  ;;  %p957_p9 = pneg %p1359_p8  ;;  %s208_s7 = int_to_ptr.vmem [resolvable:$true] %s207_s7 }
  0x14   : > { %1607 = sst [smem:[#allocation14_spill]] %s1606_s29  ;;  %s1071_s8 = scalar_lea.vmem %s208_s7, 256 }
  0x15   : > { %p958_p10 = pnand %p957_p9, %p87_p1  ;;  %p1072_p12 = scmp.ne.s32.totalorder %s208_s7, %s1071_s8 }
  0x16   : > { %p1079_p3 = scmp.lt.s32.totalorder %s208_s7, %s208_s7  ;;  %p1080_p2 = scmp.lt.s32.totalorder %s1071_s8, %s1071_s8 }
  0x17   : > { %p1062_p11 = pneg %p958_p10 }
  0x18   : > { %p1081_p6 = por %p1080_p2, %p1079_p3 }
  0x19   : > { %p1074_p13 = pnand %p1072_p12, %p1062_p11 }
  0x1b   : > { %p1075_p0 = pneg %p1074_p13 }
  0x1d   : > { %p1082_p5 = pnand %p1081_p6, %p1075_p0 }
  0x1f   : > { %1085 = shalt.err (!%p1082_p5)
}
  0x20   : > { %s1249_s9 = smov 128   ;;  %s1250_s10 = smov 8  }
  0x21   : > { %s1609_s3 = sld [smem:[#allocation18_spill]]  ;;  %s33_s13 = sadd.s32 1, %s1238_s23 }
  0x22   : > { %p34_p2 = scmp.ge.s32.totalorder %s33_s13, 2  ;;  %s36_s14 = sadd.s32 1, %s1242_s24 }
  0x23   : > { %s73_s15 = sadd.s32 1, %s1226_s20  ;;  %p80_p6 = scmp.ne.s32.totalorder %s1226_s20, %s1222_s19 }
  0x24   : > { %s1636_s13 = smov (%p34_p2, %s33_s13), 0  ;;  %s1638_s14 = smov (!%p34_p2, %s36_s14), %s1242_s24 }
  0x25   : > { %1610 = sst [smem:[#allocation15_spill]] %s1636_s13  ;;  %s69_s16 = ssub.s32 %s1238_s23, %s1636_s13 }
  0x26   : > { %p81_p7 = scmp.eq.s32.totalorder %s1246_s25, 0  ;;  %p38_p9 = scmp.ge.s32.totalorder %s1638_s14, 2 }
  0x27   : > { %960 = dma.hbm_to_vmem [thread:$0]  (!%p958_p10), %s1609_s3, 256, %s208_s7, [#allocation6], %s1249_s9, %s1249_s9, %s1250_s10  }
  0x28   : > { %p1611_p11 = scmp.eq.s32.totalorder %s1340_s26, 3  ;;  %p1387_p10 = por %p81_p7, %p80_p6 }
  0x29   : > { %p973_p13 = scmp.lt.s32.totalorder %s1246_s25, 4  ;;  %s1640_s14 = smov (%p38_p9, %s1638_s14), 0 }
  0x2a   : > { %p1383_p12 = por %p1611_p11, %p80_p6  ;;  %1615 = sst [smem:[#allocation17_spill]] %s1640_s14 }
  0x2b   : > { %s235_s6 = sand.u32 1, %s1226_s20   ;;  %s888_s7 = sshll.u32 %s1242_s24, 1 }
  0x2c   : > { %s1612_s17 = scalar_select %p1383_p12, 1, 0 }
  0x2d   : > { %s68_s8 = ssub.s32 %s1242_s24, %s1640_s14  ;;  %s1398_s10 = sshll.u32 %s235_s6, 2 }
  0x2e   : > { %1613 = sst [smem:[#allocation16_spill]] %s1612_s17  ;;  %s70_s9 = sor.u32 %s69_s16, %s68_s8 }
  0x2f   : > { %p71_p0 = scmp.eq.s32.totalorder %s70_s9, 0  ;;  %s244_s11 = sadd.s32 %s1238_s23, %s888_s7 }
  0x30   : > { %s239_s12 = scalar_lea.vmem [#allocation2], %s1398_s10  ;;  %s889_s29 = sshll.u32 %s244_s11, 6 }
  0x31   : > { %s248_s3 = sshll.u32 %s239_s12, 4  ;;  %s246_s17 = scalar_lea.hbm %s1590_s1, %s889_s29  ;;  %s249_s3 = int_to_ptr.vmem [resolvable:$true] %s248_s3 }
  0x32   : > { %s1403_s13 = scalar_select %p71_p0, %s1226_s20, %s73_s15  }
  0x33   : > { %p1412_p3 = pnand %p973_p13, %p1387_p10  ;;  %s1419_s7 = scalar_lea.hbm %s1591_s2, %s889_s29 }
  0x34   : > { %s255_s15 = sand.u32 1, %s1246_s25   ;;  %s236_s9 = scalar_lea.sflag [#allocation3], %s235_s6 }
  0x35   : > { %p1088_p5 = pneg %p1412_p3  ;;  %s1099_s11 = scalar_lea.vmem %s249_s3, 64 }
  0x36   : > { %p1100_p2 = scmp.ne.s32.totalorder %s249_s3, %s1099_s11  ;;  %s1251_s5 = smov [#allocation2]  }
  0x37   : > { %s1104_s18 = sshll.u32 %s1251_s5, 4  ;;  %s1105_s18 = int_to_ptr.vmem [resolvable:$false] %s1104_s18 }
  0x38   : > { %p1102_p6 = pnand %p1100_p2, %p1088_p5  ;;  %s1106_s27 = scalar_lea.vmem %s1105_s18, 128 }
  0x39   : > { %p1107_p9 = scmp.lt.s32.totalorder %s249_s3, %s1105_s18  ;;  %p1108_p11 = scmp.lt.s32.totalorder %s1106_s27, %s1099_s11 }
  0x3a   : > { %p1103_p7 = pneg %p1102_p6 }
  0x3b   : > { %p1109_p10 = por %p1108_p11, %p1107_p9 }
  0x3d   : > { %p1110_p13 = pnand %p1109_p10, %p1103_p7 }
  0x3f   : > { %1113 = shalt.err (!%p1110_p13)
}
  0x40   : > { %964 = dma.hbm_to_vmem [thread:$0]  (!%p1412_p3), %s246_s17, 64, %s249_s3, %s236_s9  }
  0x41   : > { %s259_s29 = scalar_lea.vmem [#allocation5], %s1398_s10  ;;  %s256_s12 = scalar_lea.sflag [#allocation6], %s255_s15 }
  0x42   : > { %s268_s6 = sshll.u32 %s259_s29, 4  ;;  %s1252_s8 = smov [#allocation5]   ;;  %s269_s6 = int_to_ptr.vmem [resolvable:$true] %s268_s6 }
  0x43   : > { %s1127_s16 = scalar_lea.vmem %s269_s6, 64  ;;  %s1132_s11 = sshll.u32 %s1252_s8, 4  ;;  %s1133_s11 = int_to_ptr.vmem [resolvable:$false] %s1132_s11 }
  0x44   : > { %p1128_p0 = scmp.ne.s32.totalorder %s269_s6, %s1127_s16  ;;  %s1134_s5 = scalar_lea.vmem %s1133_s11, 128 }
  0x45   : > { %p1135_p7 = scmp.lt.s32.totalorder %s269_s6, %s1133_s11  ;;  %p1136_p9 = scmp.lt.s32.totalorder %s1134_s5, %s1127_s16 }
  0x46   : > { %p1130_p2 = pnand %p1128_p0, %p1088_p5 }
  0x47   : > { %p1137_p11 = por %p1136_p9, %p1135_p7 }
  0x48   : > { %p1131_p6 = pneg %p1130_p2 }
  0x4a   : > { %p1138_p10 = pnand %p1137_p11, %p1131_p6 }
  0x4c   : > { %1141 = shalt.err (!%p1138_p10)
}
  0x4d   : > { %967 = dma.hbm_to_vmem [thread:$0]  (!%p1412_p3), %s1419_s7, 64, %s269_s6, %s256_s12  }
  0x4e   : > { %277 = sbr.rel (%p1359_p8) target bundleno = 580 (0x244), region = 40  ;;  %s1439_s3 = sand.u32 (!%p1359_p8), 1, %s1222_s19  }
  0x4f   : > { %s894_s17 = sshll.u32 (!%p1359_p8), %s1439_s3, 2  ;;  %s280_s10 = scalar_lea.sflag (!%p1359_p8), [#allocation3], %s1439_s3 }
  0x50   : > { %s283_s15 = scalar_lea.vmem (!%p1359_p8), [#allocation2], %s894_s17 }
  0x53   : > { %1201 = dma.done.wait (%p1349_p4), %s280_s10, 64  }
  0x54   : > { %1203 = vsyncadd (%p1349_p4), %s280_s10, 4294967232  ;;  %s288_s14 = sand.u32 1, %s1340_s26   ;;  %s292_s30 = scalar_lea.vmem [#allocation5], %s894_s17 }
  0x55   : > { %s289_s7 = scalar_lea.sflag [#allocation6], %s288_s14 }
  0x56   : > { %1205 = dma.done.wait (%p1349_p4), %s289_s7, 64  }
  0x57   : > { %1207 = vsyncadd (%p1349_p4), %s289_s7, 4294967232 }
  0x58   : > { %1209 = dma.done.wait (%p87_p1), [#allocation6], 256  }
  0x59   : > { %1211 = vsyncadd (%p87_p1), [#allocation6], 4294967040  ;;  %p336_p8 = scmp.lt.s32.totalorder %s1234_s22, 1  ;;  %p338_p3 = scmp.lt.s32.totalorder %s1230_s21, 1  ;;  %v384_v0 = vld [vmem:[#allocation7] sm:$0xff]  ;;  %v1463_v2 = vld [vmem:[#allocation7 + $0x8] sm:$0xff]  ;;  %v358_v15 = vlaneseq }
  0x5a   : > { %s1253_s8 = smov 116   ;;  %s1254_s26 = smov 16   ;;  %v346_v3 = vld [vmem:[%s292_s30] sm:$0xf]  ;;  %vm426_vm0 = vcmask 97280   ;;  %vm355_vm1 = vcmask 130048  }
  0x5b   : > { %s337_s9 = scalar_select %p336_p8, %s1234_s22, 1  ;;  %422 = vrot.lane.b32.xlu1 %v384_v0, %s1253_s8  ;;  %937 = vmatprep.mubr.msk.f32.mxu1 %vm426_vm0, %v384_v0  ;;  %v345_v4 = vld [vmem:[%s283_s15] sm:$0xf]  ;;  %v1263_v10 = vmov 0   ;;  %v712_v13 = vld [vmem:[%s1593_s4 + $0x8] sm:$0xff]  ;;  %v359_v17 = vand.u32 127, %v358_v15 }
  0x5c   : > { %s339_s18 = scalar_select %p338_p3, %s1230_s21, 1  ;;  %1059 = vset.pattern.permute.xlu1 %v1263_v10  ;;  %1058 = vset.pattern.permute.xlu0 %v1263_v10  ;;  %v711_v14 = vld [vmem:[%s1593_s4] sm:$0xff]  ;;  %vm402_vm2 = vcmask 908288   ;;  %vm372_vm3 = vcmask 1039360   ;;  %vm382_vm5 = vcmask 1043456   ;;  %vm367_vm6 = vcmask 7168  }
  0x5d   : > { %s898_s27 = sshll.u32 %s337_s9, 1  ;;  %s1255_s11 = smov 113   ;;  %v360_v20 = vand.u32 15, %v359_v17  ;;  %vm394_vm8 = vcmask 924672   ;;  %vm606_vm9 = vcmask 777216   ;;  %vm598_vm10 = vcmask 793600  }
  0x5e   : > { %s341_s29 = sadd.s32 %s898_s27, %s339_s18  ;;  %s1256_s5 = smov 111   ;;  %vm416_vm11 = vcmask 916480   ;;  %vm619_vm12 = vcmask 785408  }
  0x5f   : > { %s899_s6 = sshll.u32 %s341_s29, 2  ;;  %424 = vrot.lane.b32.xlu1 %v1463_v2, %s1253_s8  ;;  %s1257_s17 = smov 112   ;;  %vm1486_vm4 = vcmp.ne.s32.totalorder %v360_v20, 15  ;;  %vm1501_vm7 = vcmp.ne.s32.totalorder %v360_v20, 0 }
  0x60   : > { %s343_s16 = scalar_lea.vmem %s1589_s0, %s899_s6  ;;  %s1258_s10 = smov 127  }
  0x61   : > { %v344_v1 = vld [vmem:[%s343_s16] sm:$0xf]  ;;  %s1259_s15 = smov 95   ;;  %s1260_s14 = smov 97  }
  0x62   : > { %348 = vrot.lane.b32.xlu0 %v344_v1, %s1254_s26  ;;  %s1261_s7 = smov 1   ;;  %s1262_s30 = smov 96  }
  0x63   : > { %s1264_s9 = smov 104   ;;  %s897_s12 = sshll.u32 %s1439_s3, 4 }
  0x64   : > { %s910_s28 = sshll.u32 %s1234_s22, 2  ;;  %s335_s8 = scalar_lea.vmem [#allocation8], %s897_s12 }
  0x65   : > { %s739_s16 = sadd.s32 %s1230_s21, %s910_s28 }
  0x66   : > { %352 = vrot.lane.b32.xlu0 %v346_v3, %s1254_s26  ;;  %s742_s26 = sshll.u32 %s335_s8, 4  ;;  %s1531_s26 = int_to_ptr.vmem [resolvable:$true] %s742_s26 }
  0xcd   : > { %v423_v5 = vpop.permute.xlu1 %422 }
  0xce   : > { %930 = vmatprep.mubr.msk.f32.mxu0 %vm426_vm0, %v423_v5 }
  0xd1   : > { %v425_v16 = vpop.permute.xlu1 %424 }
  0xd4   : > { %v349_v6 = vpop.permute.xlu0 %348 }
  0xd5   : > { %v1468_v7 = vsel %vm355_vm1, %v345_v4, %v349_v6 }
  0xd6   : > { %390 = vrot.lane.b32.xlu0 %v1468_v7, %s1255_s11  ;;  %398 = vrot.lane.b32.xlu1 %v1468_v7, %s1256_s5  ;;  %v380_v11 = vrot.slane %v1468_v7, 4 }
  0xd8   : > { %v353_v8 = vpop.permute.xlu0 %352 }
  0xd9   : > { %v357_v9 = vsel %vm355_vm1, %v349_v6, %v353_v8 }
  0xda   : > { %405 = vrot.lane.b32.xlu0 %v357_v9, %s1257_s17  ;;  %400 = vrot.lane.b32.xlu1 %v357_v9, %s1256_s5  ;;  %v411_v12 = vrot.slane %v357_v9, 4  ;;  %s911_s5 = sshll.u32 %s739_s16, 7 }
  0xde   : > { %369 = vrot.lane.b32.xlu0 %v1468_v7, %s1258_s10  ;;  %392 = vrot.lane.b32.xlu1 %v357_v9, %s1255_s11 }
  0xe2   : > { %602 = vrot.lane.b32.xlu0 %v1468_v7, %s1259_s15  ;;  %386 = vrot.lane.b32.xlu1 %v1468_v7, %s1257_s17 }
  0xe6   : > { %594 = vrot.lane.b32.xlu0 %v1468_v7, %s1260_s14  ;;  %364 = vrot.lane.b32.xlu1 %v1468_v7, %s1261_s7  ;;  %s1265_s7 = smov [#allocation8]  }
  0xea   : > { %609 = vrot.lane.b32.xlu0 %v357_v9, %s1262_s30  ;;  %604 = vrot.lane.b32.xlu1 %v357_v9, %s1259_s15  ;;  %s728_s15 = scalar_lea.sflag [#allocation4], %s1439_s3 }
  0xee   : > { %591 = vrot.lane.b32.xlu0 %v1468_v7, %s1262_s30  ;;  %596 = vrot.lane.b32.xlu1 %v357_v9, %s1260_s14  ;;  %s1142_s14 = scalar_lea.vmem %s1531_s26, 256 }
  0xef   : > { %p1143_p1 = scmp.ne.s32.totalorder %s1531_s26, %s1142_s14 }
  0xf1   : > { %p1144_p4 = pnand %p1143_p1, %p1383_p12 }
  0xf2   : > { %412 = vrot.lane.b32.xlu1 %v380_v11, %s1257_s17  ;;  %414 = vrot.lane.b32.xlu0 %v411_v12, %s1257_s17  ;;  %s1622_s17 = sld [smem:[#allocation19_spill]] }
  0xf3   : > { %p1145_p5 = pneg %p1144_p4 }
  0xf6   : > { %617 = vrot.lane.b32.xlu1 %v411_v12, %s1262_s30  ;;  %615 = vrot.lane.b32.xlu0 %v380_v11, %s1262_s30  ;;  %s1146_s30 = sshll.u32 %s1265_s7, 4  ;;  %s1147_s30 = int_to_ptr.vmem [resolvable:$false] %s1146_s30 }
  0xf7   : > { %p1149_p13 = scmp.lt.s32.totalorder %s1531_s26, %s1147_s30 }
  0xf8   : > { %s1536_s10 = scalar_lea.hbm %s1622_s17, %s911_s5 }
  0xfa   : > { %623 = vrot.lane.b32.xlu0 %v384_v0, %s1264_s9  ;;  %625 = vrot.lane.b32.xlu1 %v1463_v2, %s1264_s9  ;;  %s1148_s9 = scalar_lea.vmem %s1147_s30, 512 }
  0xfb   : > { %p1150_p0 = scmp.lt.s32.totalorder %s1148_s9, %s1142_s14 }
  0xfd   : > { %p1151_p2 = por %p1150_p0, %p1149_p13 }
  0xfe   : > { %720 = vperm.xlu1 %1059, %v712_v13   ;;  %715 = vperm.xlu0 %1058, %v711_v14  }
  0xff   : > { %p1152_p6 = pnand %p1151_p2, %p1145_p5 }
 0x148   : > { %v399_v18 = vpop.permute.xlu1 %398  ;;  %v391_v19 = vpop.permute.xlu0 %390 }
 0x14c   : > { %v401_v21 = vpop.permute.xlu1 %400  ;;  %v406_v22 = vpop.permute.xlu0 %405 }
 0x14d   : > { %v403_v24 = vsel %vm402_vm2, %v399_v18, %v401_v21 }
 0x14e   : > { %v408_v25 = vsel %vm372_vm3, %v403_v24, %v406_v22 }
 0x14f   : > { %v410_v26 = vsel %vm1486_vm4, %v408_v25, 0.0 }
 0x150   : > { %v393_v27 = vpop.permute.xlu1 %392  ;;  %926 = vmatprep.subr.msk.mxu0 %vm382_vm5, %v410_v26  ;;  %v370_v28 = vpop.permute.xlu0 %369 }
 0x151   : > { %927 = vmatpush3.msk.msra.mxu0 %vm382_vm5, %v410_v26  ;;  %v373_v29 = vsel %vm372_vm3, %v370_v28, %v1468_v7  ;;  %v395_v43 = vsel %vm394_vm8, %v391_v19, %v393_v27 }
 0x152   : > { %v379_v30 = vsel %vm1486_vm4, %v373_v29, 0.0 }
 0x153   : > { %933 = vmatprep.subr.msk.mxu1 %vm382_vm5, %v379_v30 }
 0x154   : > { %v387_v31 = vpop.permute.xlu1 %386  ;;  %934 = vmatpush3.msk.msra.mxu1 %vm382_vm5, %v379_v30  ;;  %v603_v32 = vpop.permute.xlu0 %602 }
 0x155   : > { %v397_v44 = vsel %vm367_vm6, %v387_v31, %v395_v43 }
 0x156   : > { %v409_v49 = vsel %vm1501_vm7, %v397_v44, 0.0 }
 0x158   : > { %v365_v33 = vpop.permute.xlu1 %364  ;;  %v595_v34 = vpop.permute.xlu0 %594 }
 0x159   : > { %v368_v36 = vsel %vm367_vm6, %v1468_v7, %v365_v33 }
 0x15a   : > { %v376_v37 = vsel %vm1501_vm7, %v368_v36, 0.0 }
 0x15b   : > { %v383_v38 = vsel %vm382_vm5, %v376_v37, %v380_v11 }
 0x15c   : > { %v605_v39 = vpop.permute.xlu1 %604  ;;  %935 = vmatprep.subr.mxu1 %v383_v38  ;;  %v610_v40 = vpop.permute.xlu0 %609 }
 0x15d   : > { %936 = vmatpush3.msra.mxu1 %v383_v38  ;;  %v607_v45 = vsel %vm606_vm9, %v603_v32, %v605_v39 }
 0x15e   : > { %938 = vmatmul.mubr.msk.f32.vlgmr.msra.gmra.mxu1 %vm426_vm0, %v1463_v2  ;;  %v612_v50 = vsel %vm372_vm3, %v607_v45, %v610_v40 }
 0x15f   : > { %v614_v54 = vsel %vm1486_vm4, %v612_v50, 0.0 }
 0x160   : > { %v597_v41 = vpop.permute.xlu1 %596  ;;  %v592_v42 = vpop.permute.xlu0 %591 }
 0x161   : > { %v599_v46 = vsel %vm598_vm10, %v595_v34, %v597_v41 }
 0x162   : > { %v601_v52 = vsel %vm367_vm6, %v592_v42, %v599_v46 }
 0x163   : > { %v613_v57 = vsel %vm1501_vm7, %v601_v52, 0.0 }
 0x164   : > { %v413_v47 = vpop.permute.xlu1 %412  ;;  %v415_v48 = vpop.permute.xlu0 %414 }
 0x165   : > { %v417_v51 = vsel %vm416_vm11, %v413_v47, %v415_v48 }
 0x166   : > { %v419_v53 = vsel %vm382_vm5, %v409_v49, %v417_v51 }
 0x167   : > { %928 = vmatprep.subr.mxu0 %v419_v53 }
 0x168   : > { %v618_v55 = vpop.permute.xlu1 %617  ;;  %929 = vmatpush3.msra.mxu0 %v419_v53  ;;  %v616_v56 = vpop.permute.xlu0 %615 }
 0x169   : > { %v620_v58 = vsel %vm619_vm12, %v616_v56, %v618_v55  ;;  %931 = vmatmul.mubr.msk.f32.vlgmr.msra.gmra.mxu0 %vm426_vm0, %v425_v16  ;;  %940 = vmatprep.subr.msk.mxu0 %vm382_vm5, %v614_v54 }
 0x16a   : > { %941 = vmatpush3.msk.msra.mxu0 %vm382_vm5, %v614_v54  ;;  %v622_v59 = vsel %vm382_vm5, %v613_v57, %v620_v58 }
 0x16b   : > { %942 = vmatprep.subr.mxu0 %v622_v59 }
 0x16c   : > { %943 = vmatpush3.msra.mxu0 %v622_v59  ;;  %v624_v60 = vpop.permute.xlu0 %623  ;;  %v626_v61 = vpop.permute.xlu1 %625 }
 0x16d   : > { %944 = vmatprep.mubr.msk.f32.mxu0 %vm426_vm0, %v624_v60 }
 0x16e   : > { %945 = vmatmul.mubr.msk.f32.vlgmr.msra.gmra.mxu0 %vm426_vm0, %v626_v61 }
 0x179   : > { %v721_v4 = vpop.permute.xlu1 %720  ;;  %v716_v8 = vpop.permute.xlu0 %715 }
 0x21e   : > { %v939_v62 = vpop.f32.mrf.mxu1 }
 0x220   : > { %v582_v1 = vpop.f32.mrf.mxu1 }
 0x229   : > { %v932_v63 = vpop.f32.mrf.mxu0 }
 0x22a   : > { %v588_v2 = vadd.f32 %v939_v62, %v932_v63 }
 0x22b   : > { %v500_v0 = vpop.f32.mrf.mxu0 }
 0x22c   : > { %v583_v5 = vadd.f32 %v582_v1, %v500_v0 }
 0x22e   : > { %v946_v3 = vpop.f32.mrf.mxu0 }
 0x22f   : > { %v710_v6 = vadd.f32 %v946_v3, %v588_v2 }
 0x230   : > { %v700_v7 = vpop.f32.mrf.mxu0 }
 0x231   : > { %v724_v9 = vadd.f32 %v721_v4, %v710_v6  ;;  %v709_v10 = vadd.f32 %v700_v7, %v583_v5 }
 0x233   : > { %726 = vst [vmem:[%s335_s8 + $0x8] sm:$0xff] %v724_v9  ;;  %v723_v11 = vadd.f32 %v716_v8, %v709_v10 }
 0x235   : > { %725 = vst [vmem:[%s335_s8] sm:$0xff] %v723_v11 }
 0x236   : > { %1155 = shalt.err (!%p1152_p6)
}
 0x237   : > { %s1156_s18 = scalar_lea.hbm %s1536_s10, 256  ;;  %s1160_s6 = scalar_lea.hbm %s1622_s17, 1024 }
 0x238   : > { %p1157_p7 = scmp.ne.s32.totalorder %s1536_s10, %s1156_s18  ;;  %p1161_p10 = scmp.lt.s32.totalorder %s1536_s10, %s1622_s17 }
 0x239   : > { %p1162_p8 = scmp.lt.s32.totalorder %s1160_s6, %s1156_s18 }
 0x23a   : > { %p1158_p9 = pnand %p1157_p7, %p1383_p12 }
 0x23b   : > { %p1163_p3 = por %p1162_p8, %p1161_p10 }
 0x23c   : > { %p1159_p11 = pneg %p1158_p9 }
 0x23e   : > { %p1164_p1 = pnand %p1163_p3, %p1159_p11 }
 0x240   : > { %1167 = shalt.err (!%p1164_p1)
}
 0x241   : > { %s1266_s16 = smov 128   ;;  %s1267_s8 = smov 256  }
 0x242   : > { %s1268_s5 = smov 8  }
 0x243   : > { %955 = dma.vmem_to_hbm [thread:$0]  (%p1383_p12), %s1531_s26, 256, %s1536_s10, %s728_s15, %s1266_s16, %s1267_s8, %s1268_s5  }
 0x244 PF: > { %s1623_s21 = sld [smem:[#allocation13_spill]]  ;;  %p975_p4 = scmp.ge.s32.totalorder %s1246_s25, 2 }
 0x245   : > { %s1624_s22 = sld [smem:[#allocation14_spill]] }
 0x24a   : > { %s757_s14 = sand.u32 1, %s1623_s21  }
 0x24b   : > { %p1625_p5 = scmp.ne.s32.totalorder %s1624_s22, 0  ;;  %s758_s7 = scalar_lea.sflag [#allocation4], %s757_s14 }
 0x24d   : > { %p969_p13 = pnand %p975_p4, %p1625_p5 }
 0x24f   : > { %p970_p0 = pneg %p969_p13 }
 0x251   : > { %1213 = dma.done.wait (%p970_p0), %s758_s7, 256  }
 0x252   : > { %1215 = vsyncadd (%p970_p0), %s758_s7, 4294967040  ;;  %s24_s25 = sadd.s32 1, %s1246_s25   ;;  %s1626_s3 = sld [smem:[#allocation15_spill]] }
 0x253   : > { %p21_p2 = scmp.ge.s32.totalorder %s24_s25, 6   ;;  %s1627_s26 = sld [smem:[#allocation17_spill]] }
 0x254   : > { %s1628_s18 = smov %s1222_s19  ;;  %s1629_s19 = smov %s1226_s20 }
 0x255   : > { %s1630_s20 = smov %s1403_s13  ;;  %s1631_s21 = smov %s1238_s23 }
 0x256   : > { %s1632_s22 = smov %s1242_s24  ;;  %23 = sbr.rel (!%p21_p2) target bundleno = 12 (0xc), region = 105 }
 0x258   : > { %s1633_s23 = smov %s1626_s3 }
 0x259   : > { %s1634_s24 = smov %s1627_s26 }
 0x25b   :  { %763 = vsyncpa [#allocation3], 1 }
 0x25c   :  { %765 = vsyncpa [#allocation3 + $0x1], 1 }
 0x25d   :  { %766 = vsyncpa [#allocation6], 1 }
 0x25e   :  { %768 = vsyncpa [#allocation6 + $0x1], 1 }
 0x25f   :  { %769 = vsyncpa [#allocation4], 1 }
 0x260   :  { %771 = vsyncpa [#allocation4 + $0x1], 1 }

</bundles_post_ra>
